<compile_context>
chip_gen: v7x
topology: tpu7x:2x2x1
jax: 0.10.0
libtpu: 0.0.40
codegen_flags: <defaults>
</compile_context>

<pallas_src>
import jax
import jax.numpy as jnp
from jax import lax
from jax.experimental import pallas as pl
from jax.experimental.pallas import tpu as pltpu


# --------------------------------------------------------------------------- #
# Pallas kernel: per-batch-tile sentence scores.
# --------------------------------------------------------------------------- #
def _sort_score_kernel(x_ref, score_ref):
    # x_ref: (TB, S, D) block (input dtype); score_ref: (TB, S) f32.
    xf = x_ref[...].astype(jnp.float32)                        # (TB, S, D)
    S = xf.shape[1]

    # F.normalize(x, p=2, dim=-1, eps=1e-12): x / max(||x||, 1e-12).
    # rsqrt(max(ss, 1e-24)) == 1 / max(sqrt(ss), 1e-12)  (sqrt is monotone).
    ss = jnp.sum(xf * xf, axis=-1, keepdims=True)              # (TB, S, 1)
    inv = lax.rsqrt(jnp.maximum(ss, 1e-24))                    # (TB, S, 1)
    inv2 = inv[..., 0]                                         # (TB, S)

    # sen_doc_i = xn_i . xn_last = (x_i . x_last) * inv_i * inv_last
    last = xf[:, -1:, :]                                       # (TB, 1, D)
    sen_doc = jnp.sum(xf * last, axis=-1) * inv2 * inv2[:, -1:]  # (TB, S)

    # sen_sen_i = mean_j(xn_i . xn_j) = xn_i . mean_j(xn_j)
    #           = (x_i . sum_j(x_j * inv_j)) * inv_i / S
    colsum = jnp.sum(xf * inv, axis=1, keepdims=True)          # (TB, 1, D)
    sen_sen = jnp.sum(xf * colsum, axis=-1) * inv2 * (1.0 / S)  # (TB, S)

    sen_doc = jnp.where(sen_doc > 0.0, sen_doc, 0.0)
    sen_sen = jnp.where(sen_sen > 0.0, sen_sen, 1.0)

    score_ref[...] = sen_doc * 0.9 + (1.0 - sen_sen) * 0.1     # (TB, S)


# --------------------------------------------------------------------------- #
# Tiling heuristics.
# --------------------------------------------------------------------------- #
def _tpu_info():
    try:
        vmem = int(pltpu.get_tpu_info().vmem_capacity_bytes)
    except Exception:
        vmem = 64 << 20
    # Heuristic: 64 MiB VMEM per TensorCore => v7x (2 TCs/chip); v5e/v6e have
    # 128 MiB VMEM and a single TensorCore.
    two_cores = vmem <= (64 << 20)
    return vmem, two_cores


def _round_up(a, m):
    return ((a + m - 1) // m) * m


def _pick_tile_batch(B, S, D, in_itemsize, vmem_cap, two_cores):
    """Batch-tile size TB.  Invariant: TB == B (single tile) or TB % 8 == 0, so
    the (TB, S) output block satisfies the sublane constraint even when B % TB
    != 0 (partial final block handled by grid = cdiv(B, TB))."""
    # VMEM per batch element: 2x double-buffered input block + ~2 f32 working
    # arrays (upcast + one fused intermediate) + small row/col temps + score.
    per_b = S * D * (2 * in_itemsize + 2 * 4) + 4 * S * 4 + 2 * D * 4
    budget = max(per_b, vmem_cap // 2)
    tb_cap = max(1, budget // per_b)

    if tb_cap >= B:
        if two_cores and B >= 16 and B % 16 == 0:
            return B // 2        # two equal tiles -> both v7x TensorCores busy
        return B                 # single-TC chips: one big tile, no step overhead

    if B <= 8 or tb_cap < 8:
        # Batch too small to tile at sublane granularity (or a single element
        # barely fits): take it whole and rely on the raised vmem limit.
        # TODO(synk): add an S-tiling (two-pass colsum) fallback for very large
        # S*D per batch element on v7x's 64 MiB VMEM.
        return B

    tb = (tb_cap // 8) * 8
    if two_cores:
        nt = pl.cdiv(B, tb)
        if nt % 2 == 1:
            # Prefer an even tile count so megacore splits evenly across TCs.
            tb = min(tb, max(8, _round_up(pl.cdiv(B, nt + 1), 8)))
    return tb


def _compute_scores(x):
    B, S, D = x.shape
    vmem_cap, two_cores = _tpu_info()
    itemsize = x.dtype.itemsize
    TB = _pick_tile_batch(B, S, D, itemsize, vmem_cap, two_cores)
    num_tiles = pl.cdiv(B, TB)

    cost = pl.CostEstimate(
        flops=8 * B * S * D,
        transcendentals=B * S,
        bytes_accessed=B * S * D * itemsize + B * S * 4,
    )

    score = pl.pallas_call(
        _sort_score_kernel,
        out_shape=jax.ShapeDtypeStruct((B, S), jnp.float32),
        grid_spec=pltpu.PrefetchScalarGridSpec(
            num_scalar_prefetch=0,
            grid=(num_tiles,),
            in_specs=[pl.BlockSpec((TB, S, D), lambda t: (t, 0, 0))],
            out_specs=pl.BlockSpec((TB, S), lambda t: (t, 0)),
        ),
        compiler_params=pltpu.CompilerParams(
            dimension_semantics=("parallel",),
            vmem_limit_bytes=int(min(vmem_cap * 3 // 4, 128 << 20)),
        ),
        cost_estimate=cost,
    )(x)
    return score                                               # (B, S) f32


# --------------------------------------------------------------------------- #
# Forward pass (mirrors Sort_Module.forward with max_sen_num=None, landmark=None)
# --------------------------------------------------------------------------- #
def sort_module_forward(x, adj, max_sen_num=None, landmark=None):
    """Returns (x_m, x_mask, adj_mask, argsorted_idx, score)."""
    assert max_sen_num is None and landmark is None
    # TODO(synk): the max_sen_num / filter_by_section path (per-section,
    # data-dependent-length top-k with python loops) is not implemented.
    B, S, D = x.shape
    n_cand = S - 6

    score = _compute_scores(x)[:, :n_cand]                     # (B, S-6) f32

    # Descending top-k (torch.argsort(desc)[:, :180]); top_k avoids a full
    # O(n log n) sort.  Tie-break order may differ from torch, but the kept
    # mask below is identical.
    k = min(180, n_cand)
    _, argsorted = lax.top_k(score, k)                         # (B, k) int32

    # kept[i, j] == True iff sentence j survives (candidates in top-k; the last
    # 6 "section/doc" rows are never masked).  Boolean scatter: O(B*k).
    kept = jnp.zeros((B, S), dtype=bool)
    kept = kept.at[jnp.arange(B)[:, None], argsorted].set(True)
    kept = kept | (jnp.arange(S)[None, :] >= n_cand)           # (B, S) bool

    # Masks of ones/zeros matching torch.ones_like semantics.
    x_mask = jnp.broadcast_to(kept[:, :, None], x.shape).astype(x.dtype)
    adj_mask = (kept[:, :, None] & kept[:, None, :]).astype(adj.dtype)

    return x, x_mask, adj_mask, argsorted, score[..., None]


if __name__ == "__main__":
    key = jax.random.PRNGKey(0)
    kx, ka = jax.random.split(key)
    B, S, D = 2, 16, 32                    # S-6 = 10 candidate sentences
    x = jax.random.normal(kx, (B, S, D), dtype=jnp.float32)
    adj = (jax.random.uniform(ka, (B, S, S)) > 0.5).astype(jnp.float32)

    outs = sort_module_forward(x, adj)
    outs = jax.block_until_ready(outs)

    x_m, x_mask, adj_mask, idx, score = outs
    assert x_m.shape == (B, S, D)
    assert x_mask.shape == (B, S, D)
    assert adj_mask.shape == (B, S, S)
    assert idx.shape == (B, S - 6)
    assert score.shape == (B, S - 6, 1)
    assert bool(jnp.all(jnp.isfinite(score)))
    print("KERNEL_OK")
</pallas_src>

<mosaic_0001>
module attributes {stable_mosaic.version = 11 : i64} {
  func.func @_sort_score_kernel(%arg0: i32, %arg1: memref<2x16x32xf32, #tpu.memory_space<vmem>>, %arg2: memref<2x16xf32, #tpu.memory_space<vmem>>) attributes {dimension_semantics = [#tpu.dimension_semantics<parallel>], iteration_bounds = array<i64: 1>, scalar_prefetch = 0 : i64, scratch_operands = 0 : i64, tpu.core_type = #tpu.core_type<tc>, window_params = [{transform_indices = @transform_0, window_bounds = array<i64: 2, 16, 32>}, {transform_indices = @transform_1, window_bounds = array<i64: 2, 16>}]} {
    %c0 = arith.constant 0 : index
    %c0_0 = arith.constant 0 : index
    %c0_1 = arith.constant 0 : index
    %0 = vector.load %arg1[%c0, %c0_0, %c0_1] : memref<2x16x32xf32, #tpu.memory_space<vmem>>, vector<2x16x32xf32>
    %1 = arith.mulf %0, %0 : vector<2x16x32xf32>
    %cst = arith.constant dense<0.000000e+00> : vector<2x16xf32>
    %2 = vector.multi_reduction <add>, %1, %cst [2] : vector<2x16x32xf32> to vector<2x16xf32>
    %3 = vector.shape_cast %2 : vector<2x16xf32> to vector<2x16x1xf32>
    %cst_2 = arith.constant 1.000000e-24 : f32
    %4 = vector.broadcast %cst_2 : f32 to vector<2x16x1xf32>
    %5 = arith.maximumf %3, %4 : vector<2x16x1xf32>
    %6 = math.rsqrt %5 : vector<2x16x1xf32>
    %7 = vector.shape_cast %6 : vector<2x16x1xf32> to vector<2x16xf32>
    %8 = vector.extract_strided_slice %0 {offsets = [0, 15, 0], sizes = [2, 1, 32], strides = [1, 1, 1]} : vector<2x16x32xf32> to vector<2x1x32xf32>
    %9 = vector.broadcast %8 : vector<2x1x32xf32> to vector<2x16x32xf32>
    %10 = arith.mulf %0, %9 : vector<2x16x32xf32>
    %cst_3 = arith.constant dense<0.000000e+00> : vector<2x16xf32>
    %11 = vector.multi_reduction <add>, %10, %cst_3 [2] : vector<2x16x32xf32> to vector<2x16xf32>
    %12 = arith.mulf %11, %7 : vector<2x16xf32>
    %13 = vector.extract_strided_slice %7 {offsets = [0, 15], sizes = [2, 1], strides = [1, 1]} : vector<2x16xf32> to vector<2x1xf32>
    %14 = vector.broadcast %13 : vector<2x1xf32> to vector<2x16xf32>
    %15 = arith.mulf %12, %14 : vector<2x16xf32>
    %16 = vector.broadcast %6 : vector<2x16x1xf32> to vector<2x16x32xf32>
    %17 = arith.mulf %0, %16 : vector<2x16x32xf32>
    %cst_4 = arith.constant dense<0.000000e+00> : vector<2x32xf32>
    %18 = vector.multi_reduction <add>, %17, %cst_4 [1] : vector<2x16x32xf32> to vector<2x32xf32>
    %19 = vector.shape_cast %18 : vector<2x32xf32> to vector<2x1x32xf32>
    %20 = vector.broadcast %19 : vector<2x1x32xf32> to vector<2x16x32xf32>
    %21 = arith.mulf %0, %20 : vector<2x16x32xf32>
    %cst_5 = arith.constant dense<0.000000e+00> : vector<2x16xf32>
    %22 = vector.multi_reduction <add>, %21, %cst_5 [2] : vector<2x16x32xf32> to vector<2x16xf32>
    %23 = arith.mulf %22, %7 : vector<2x16xf32>
    %cst_6 = arith.constant 6.250000e-02 : f32
    %24 = vector.broadcast %cst_6 : f32 to vector<2x16xf32>
    %25 = arith.mulf %23, %24 : vector<2x16xf32>
    %cst_7 = arith.constant 0.000000e+00 : f32
    %26 = vector.broadcast %cst_7 : f32 to vector<2x16xf32>
    %27 = arith.cmpf ogt, %15, %26 : vector<2x16xf32>
    %cst_8 = arith.constant 0.000000e+00 : f32
    %28 = vector.broadcast %cst_8 : f32 to vector<2x16xf32>
    %29 = arith.select %27, %15, %28 : vector<2x16xi1>, vector<2x16xf32>
    %cst_9 = arith.constant 0.000000e+00 : f32
    %30 = vector.broadcast %cst_9 : f32 to vector<2x16xf32>
    %31 = arith.cmpf ogt, %25, %30 : vector<2x16xf32>
    %cst_10 = arith.constant 1.000000e+00 : f32
    %32 = vector.broadcast %cst_10 : f32 to vector<2x16xf32>
    %33 = arith.select %31, %25, %32 : vector<2x16xi1>, vector<2x16xf32>
    %cst_11 = arith.constant 0.899999976 : f32
    %34 = vector.broadcast %cst_11 : f32 to vector<2x16xf32>
    %35 = arith.mulf %29, %34 : vector<2x16xf32>
    %cst_12 = arith.constant 1.000000e+00 : f32
    %36 = vector.broadcast %cst_12 : f32 to vector<2x16xf32>
    %37 = arith.subf %36, %33 : vector<2x16xf32>
    %cst_13 = arith.constant 1.000000e-01 : f32
    %38 = vector.broadcast %cst_13 : f32 to vector<2x16xf32>
    %39 = arith.mulf %37, %38 : vector<2x16xf32>
    %40 = arith.addf %35, %39 : vector<2x16xf32>
    %c0_14 = arith.constant 0 : index
    %c0_15 = arith.constant 0 : index
    %41 = vector.load %arg2[%c0_14, %c0_15] : memref<2x16xf32, #tpu.memory_space<vmem>>, vector<2x16xf32>
    tpu.vector_store %arg2[%c0_14, %c0_15], %40 {strides = array<i32>} : memref<2x16xf32, #tpu.memory_space<vmem>>, vector<2x16xf32>,
    return
  }
  func.func @transform_0(%arg0: i32) -> (i32, i32, i32) {
    %c0_i32 = arith.constant 0 : i32
    %c0_i32_0 = arith.constant 0 : i32
    %c0_i32_1 = arith.constant 0 : i32
    return %arg0, %c0_i32, %c0_i32_0 : i32, i32, i32
  }
  func.func @transform_1(%arg0: i32) -> (i32, i32) {
    %c0_i32 = arith.constant 0 : i32
    %c0_i32_0 = arith.constant 0 : i32
    return %arg0, %c0_i32 : i32, i32
  }
}

</mosaic_0001>

<bundles_post_ra>
// kernel: tpu_custom_call.1
= control target key start
LH: loop header
LB: loop body
LE: loop exit
PB: predicated region body
PF: predicated region fallthrough
CT: control target
= control target key end

     0   :  { %6 = vsyncpa [#allocation3], 0  ;;  %s369_s0 = inlined_call_operand.hbm [shape: f32[2,16,32], index: 0, kind: input, shape index: {}]   ;;  %s370_s1 = inlined_call_operand.hbm [shape: f32[2,16], index: 1, kind: output, shape index: {}]  }
   0x1   :  { %7 = vsyncpa [#allocation4], 0  ;;  %s276_s6 = smov [#allocation2]   ;;  %s228_s10 = scalar_lea.hbm %s369_s0, 512 }
   0x2   :  { %s13_s7 = sshll.u32 %s276_s6, 4  ;;  %p229_p0 = scmp.ne.s32.totalorder %s369_s0, %s228_s10  ;;  %s14_s7 = int_to_ptr.vmem [resolvable:$true] %s13_s7 }
   0x3   :  { %p232_p1 = scmp.lt.u32.totalorder %s228_s10, %s369_s0 }
   0x5   :  { %p234_p2 = pnand %p232_p1, %p229_p0 }
   0x7   :  { %237 = shalt.err (!%p234_p2)
}
   0x8   :  { %s238_s15 = scalar_lea.vmem %s14_s7, 512  ;;  %p243_p4 = scmp.lt.s32.totalorder %s14_s7, %s14_s7 }
   0x9   :  { %p239_p3 = scmp.ne.s32.totalorder %s14_s7, %s238_s15  ;;  %p244_p5 = scmp.lt.s32.totalorder %s238_s15, %s238_s15 }
   0xb   :  { %p245_p6 = por %p244_p5, %p243_p4 }
   0xd   :  { %p246_p7 = pnand %p245_p6, %p239_p3 }
   0xf   :  { %249 = shalt.err (!%p246_p7)
}
  0x10   :  { %s277_s16 = smov 128   ;;  %s278_s17 = smov 8  }
  0x11   :  { %19 = dma.hbm_to_vmem [thread:$0]  %s369_s0, 512, %s14_s7, [#allocation3], %s277_s16, %s277_s16, %s278_s17  }
  0x12   :  { %272 = dma.done.wait [#allocation3], 512  }
  0x13   :  { %273 = vsyncadd [#allocation3], 4294966784  ;;  %v52_v0 = vlaneseq  ;;  %v308_v3 = vld [vmem:[#allocation2 + $0x10] sm:$0xff]  ;;  %vm31_vm0 = vcmask 261120   ;;  %v23_v4 = vld [vmem:[#allocation2] sm:$0xff]  ;;  %vm185_vm9 = vcmask 130112  }
  0x14   :  { %v310_v5 = vld [vmem:[#allocation2 + $0x18] sm:$0xff]  ;;  %v29_v6 = vmul.f32 %v308_v3, %v308_v3  ;;  %v27_v7 = vmul.f32 %v23_v4, %v23_v4  ;;  %v24_v9 = vld [vmem:[#allocation2 + $0x8] sm:$0xff]  ;;  %s279_s0 = smov [#allocation5]   ;;  %vm196_vm10 = vcmask 1041409   ;;  %vm199_vm11 = vcmask 123904  }
  0x15   :  { %v303_v1 = vshrl.u32 %v52_v0, 7  ;;  %v30_v8 = vmul.f32 %v310_v5, %v310_v5  ;;  %v28_v10 = vmul.f32 %v24_v9, %v24_v9  ;;  %s207_s20 = sshll.u32 %s279_s0, 4  ;;  %s208_s20 = int_to_ptr.vmem [resolvable:$true] %s207_s20 }
  0x16   :  { %v38_v12 = vsel %vm31_vm0, %v29_v6, 0.0  ;;  %v32_v13 = vsel %vm31_vm0, %v27_v7, 0.0  ;;  %s250_s21 = scalar_lea.vmem %s208_s20, 32  ;;  %p255_p9 = scmp.lt.s32.totalorder %s208_s20, %s208_s20 }
  0x17   :  { %v306_v2 = vsub.s32 7, %v303_v1  ;;  %39 = vadd.xlane.f32.xlu1 %v38_v12  ;;  %33 = vadd.xlane.f32.xlu0 %v32_v13  ;;  %v41_v14 = vsel %vm31_vm0, %v30_v8, 0.0  ;;  %v35_v15 = vsel %vm31_vm0, %v28_v10, 0.0  ;;  %p251_p8 = scmp.ne.s32.totalorder %s208_s20, %s250_s21  ;;  %p256_p10 = scmp.lt.s32.totalorder %s250_s21, %s250_s21 }
  0x19   :  { %v55_v11 = vrot.slane %v24_v9, %v306_v2  ;;  %v59_v56 = vrot.slane %v310_v5, %v306_v2  ;;  %p257_p11 = por %p256_p10, %p255_p9 }
  0x1b   :  { %v60_v16 = vmul.f32 %v55_v11, %v23_v4  ;;  %v61_v17 = vmul.f32 %v55_v11, %v24_v9  ;;  %42 = vadd.xlane.f32.xlu1 %v41_v14  ;;  %36 = vadd.xlane.f32.xlu0 %v35_v15  ;;  %v63_v61 = vmul.f32 %v59_v56, %v310_v5  ;;  %p258_p12 = pnand %p257_p11, %p251_p8 }
  0x1c   :  { %v62_v62 = vmul.f32 %v59_v56, %v308_v3 }
  0x1d   :  { %v64_v18 = vsel %vm31_vm0, %v60_v16, 0.0  ;;  %v67_v19 = vsel %vm31_vm0, %v61_v17, 0.0  ;;  %v73_v6 = vsel %vm31_vm0, %v63_v61, 0.0 }
  0x1e   :  { %v70_v7 = vsel %vm31_vm0, %v62_v62, 0.0 }
  0x1f   :  { %65 = vadd.xlane.f32.xlu0 %v64_v18  ;;  %68 = vadd.xlane.f32.xlu1 %v67_v19  ;;  %v175_v19 = vand.u32 127, %v52_v0 }
  0xa4   :  { %v40_v20 = vpop.xlane.xlu1 %39  ;;  %v34_v21 = vpop.xlane.xlu0 %33 }
  0xa5   :  { %v46_v22 = vmax.f32 %v40_v20, 1e-24  ;;  %v44_v23 = vmax.f32 %v34_v21, 1e-24 }
  0xa7   :  { %220 = vrsqrt.f32 %v46_v22 }
  0xa8   :  { %222 = vrsqrt.f32 %v44_v23  ;;  %v43_v24 = vpop.xlane.xlu1 %42  ;;  %v37_v25 = vpop.xlane.xlu0 %36 }
  0xa9   :  { %v47_v26 = vmax.f32 %v43_v24, 1e-24  ;;  %v45_v27 = vmax.f32 %v37_v25, 1e-24 }
  0xab   :  { %224 = vrsqrt.f32 %v47_v26 }
  0xac   :  { %226 = vrsqrt.f32 %v45_v27  ;;  %v69_v8 = vpop.xlane.xlu1 %68 }
  0xb1   :  { %v323_v28 = vpop.eup %220 }
  0xb2   :  { %v223_v29 = vpop.eup %222  ;;  %v94_v30 = vmul.f32 %v323_v28, %v308_v3 }
  0xb3   :  { %v92_v32 = vmul.f32 %v223_v29, %v23_v4 }
  0xb4   :  { %v105_v35 = vsel %vm31_vm0, %v94_v30, 0.0 }
  0xb5   :  { %v327_v31 = vpop.eup %224  ;;  %v96_v38 = vsel %vm31_vm0, %v92_v32, 0.0 }
  0xb6   :  { %v227_v33 = vpop.eup %226  ;;  %v95_v34 = vmul.f32 %v327_v31, %v310_v5  ;;  %v87_v0 = vrot.slane %v327_v31, %v306_v2 }
  0xb7   :  { %v93_v36 = vmul.f32 %v227_v33, %v24_v9  ;;  %v83_v10 = vrot.slane %v227_v33, %v306_v2  ;;  %v77_v11 = vmul.f32 %v227_v33, %v69_v8 }
  0xb8   :  { %v106_v37 = vsel %vm31_vm0, %v95_v34, 0.0  ;;  %v180_v34 = vadd.s32 4294967288, %v175_v19 }
  0xb9   :  { %v97_v39 = vsel %vm31_vm0, %v93_v36, 0.0  ;;  %v107_v40 = vadd.f32 %v106_v37, %v105_v35 }
  0xba   :  { %v98_v41 = vadd.f32 %v97_v39, %v96_v38  ;;  %v183_v2 = vsub.s32 %v180_v34, %v303_v1 }
  0xbb   :  { %v108_v42 = vrot.slane %v107_v40, 4 }
  0xbc   :  { %v99_v43 = vrot.slane %v98_v41, 4 }
  0xbd   :  { %v109_v44 = vadd.f32 %v108_v42, %v107_v40 }
  0xbe   :  { %v100_v45 = vadd.f32 %v99_v43, %v98_v41 }
  0xbf   :  { %v110_v46 = vrot.slane %v109_v44, 2 }
  0xc0   :  { %v101_v47 = vrot.slane %v100_v45, 2 }
  0xc1   :  { %v111_v48 = vadd.f32 %v110_v46, %v109_v44 }
  0xc2   :  { %v102_v49 = vadd.f32 %v101_v47, %v100_v45 }
  0xc3   :  { %v112_v50 = vrot.slane %v111_v48, 1 }
  0xc4   :  { %v103_v51 = vrot.slane %v102_v49, 1 }
  0xc5   :  { %v113_v53 = vadd.f32 %v112_v50, %v111_v48 }
  0xc6   :  { %v104_v52 = vadd.f32 %v103_v51, %v102_v49  ;;  %v178_v49 = vsub.s32 %v175_v19, %v303_v1 }
  0xc7   :  { %v117_v59 = vmul.f32 %v113_v53, %v310_v5  ;;  %v116_v60 = vmul.f32 %v113_v53, %v308_v3  ;;  %v89_v3 = vmul.f32 %v83_v10, %v77_v11 }
  0xc8   :  { %v115_v54 = vmul.f32 %v104_v52, %v24_v9  ;;  %v114_v55 = vmul.f32 %v104_v52, %v23_v4  ;;  %v66_v9 = vpop.xlane.xlu0 %65 }
  0xc9   :  { %v127_v63 = vsel %vm31_vm0, %v117_v59, 0.0  ;;  %v124_v4 = vsel %vm31_vm0, %v116_v60, 0.0  ;;  %v76_v5 = vmul.f32 %v223_v29, %v66_v9  ;;  %vm139_vm2 = vcmp.gt.f32.partialorder %v89_v3, 0.0 }
  0xca   :  { %v121_v57 = vsel %vm31_vm0, %v115_v54, 0.0  ;;  %v118_v58 = vsel %vm31_vm0, %v114_v55, 0.0 }
  0xcb   :  { %122 = vadd.xlane.f32.xlu1 %v121_v57  ;;  %119 = vadd.xlane.f32.xlu0 %v118_v58  ;;  %v88_v12 = vmul.f32 %v83_v10, %v76_v5 }
  0xcd   :  { %vm138_vm1 = vcmp.gt.f32.partialorder %v88_v12, 0.0 }
  0xce   :  { %v142_v32 = vsel %vm138_vm1, %v88_v12, 0.0 }
  0xcf   :  { %128 = vadd.xlane.f32.xlu1 %v127_v63  ;;  %125 = vadd.xlane.f32.xlu0 %v124_v4  ;;  %v154_v43 = vmul.f32 0.9, %v142_v32 }
  0xd3   :  { %74 = vadd.xlane.f32.xlu1 %v73_v6  ;;  %71 = vadd.xlane.f32.xlu0 %v70_v7 }
 0x158   :  { %v123_v13 = vpop.xlane.xlu1 %122  ;;  %v120_v14 = vpop.xlane.xlu0 %119 }
 0x159   :  { %v131_v15 = vmul.f32 %v227_v33, %v123_v13  ;;  %v130_v16 = vmul.f32 %v223_v29, %v120_v14  ;;  %v143_v33 = vsel %vm139_vm2, %v89_v3, 0.0 }
 0x15a   :  { %v155_v45 = vmul.f32 0.9, %v143_v33 }
 0x15b   :  { %v135_v17 = vmul.f32 0.0625, %v131_v15  ;;  %v134_v18 = vmul.f32 0.0625, %v130_v16 }
 0x15c   :  { %v129_v20 = vpop.xlane.xlu1 %128  ;;  %v126_v21 = vpop.xlane.xlu0 %125 }
 0x15d   :  { %vm147_vm3 = vcmp.gt.f32.partialorder %v135_v17, 0.0  ;;  %vm146_vm4 = vcmp.gt.f32.partialorder %v134_v18, 0.0  ;;  %v133_v22 = vmul.f32 %v327_v31, %v129_v20  ;;  %v132_v23 = vmul.f32 %v323_v28, %v126_v21 }
 0x15e   :  { %v151_v24 = vsel %vm147_vm3, %v135_v17, 1.0  ;;  %v150_v25 = vsel %vm146_vm4, %v134_v18, 1.0 }
 0x15f   :  { %v159_v26 = vsub.f32 1.0, %v151_v24  ;;  %v158_v27 = vsub.f32 1.0, %v150_v25  ;;  %v137_v30 = vmul.f32 0.0625, %v133_v22  ;;  %v136_v29 = vmul.f32 0.0625, %v132_v23 }
 0x160   :  { %v75_v35 = vpop.xlane.xlu1 %74  ;;  %v72_v36 = vpop.xlane.xlu0 %71 }
 0x161   :  { %v163_v37 = vmul.f32 0.1, %v159_v26  ;;  %v162_v38 = vmul.f32 0.1, %v158_v27  ;;  %vm149_vm5 = vcmp.gt.f32.partialorder %v137_v30, 0.0  ;;  %vm148_vm6 = vcmp.gt.f32.partialorder %v136_v29, 0.0 }
 0x162   :  { %v153_v39 = vsel %vm149_vm5, %v137_v30, 1.0  ;;  %v152_v40 = vsel %vm148_vm6, %v136_v29, 1.0  ;;  %v79_v41 = vmul.f32 %v327_v31, %v75_v35  ;;  %v78_v42 = vmul.f32 %v323_v28, %v72_v36 }
 0x163   :  { %v161_v44 = vsub.f32 1.0, %v153_v39  ;;  %v160_v46 = vsub.f32 1.0, %v152_v40  ;;  %v167_v50 = vadd.f32 %v163_v37, %v155_v45  ;;  %v166_v51 = vadd.f32 %v162_v38, %v154_v43 }
 0x164   :  { %v91_v47 = vmul.f32 %v87_v0, %v79_v41  ;;  %v90_v48 = vmul.f32 %v87_v0, %v78_v42 }
 0x165   :  { %v165_v52 = vmul.f32 0.1, %v161_v44  ;;  %v164_v31 = vmul.f32 0.1, %v160_v46  ;;  %v184_v56 = vrot.slane %v167_v50, %v183_v2  ;;  %v179_v57 = vrot.slane %v166_v51, %v178_v49 }
 0x166   :  { %vm141_vm7 = vcmp.gt.f32.partialorder %v91_v47, 0.0  ;;  %vm140_vm8 = vcmp.gt.f32.partialorder %v90_v48, 0.0 }
 0x167   :  { %v145_v53 = vsel %vm141_vm7, %v91_v47, 0.0  ;;  %v144_v54 = vsel %vm140_vm8, %v90_v48, 0.0  ;;  %v186_v1 = vsel %vm185_vm9, %v184_v56, %v179_v57 }
 0x168   :  { %v157_v55 = vmul.f32 0.9, %v145_v53  ;;  %v156_v28 = vmul.f32 0.9, %v144_v54 }
 0x16a   :  { %v169_v58 = vadd.f32 %v165_v52, %v157_v55  ;;  %v168_v59 = vadd.f32 %v164_v31, %v156_v28 }
 0x16c   :  { %v194_v60 = vrot.slane %v169_v58, %v183_v2  ;;  %v190_v61 = vrot.slane %v168_v59, %v178_v49 }
 0x16e   :  { %v195_v62 = vsel %vm185_vm9, %v194_v60, %v190_v61 }
 0x16f   :  { %v197_v63 = vsel %vm196_vm10, %v195_v62, %v186_v1 }
 0x170   :  { %200 = vst.msk [vmem:[#allocation5] sm:$0x3] %vm199_vm11, %v197_v63 }
 0x171   :  { %261 = shalt.err (!%p258_p12)
}
 0x172   :  { %s262_s24 = scalar_lea.hbm %s370_s1, 32 }
 0x173   :  { %p263_p13 = scmp.ne.s32.totalorder %s370_s1, %s262_s24  ;;  %p266_p0 = scmp.lt.u32.totalorder %s262_s24, %s370_s1 }
 0x175   :  { %p268_p1 = pnand %p266_p0, %p263_p13 }
 0x177   :  { %271 = shalt.err (!%p268_p1)
}
 0x178   :  { %210 = dma.vmem_to_hbm [thread:$0]  %s208_s20, 32, %s370_s1, [#allocation4]  }
 0x179   :  { %274 = dma.done.wait [#allocation4], 32  }
 0x17a   :  { %275 = vsyncadd [#allocation4], 4294967264 }
 0x17b   :  { %214 = vsyncpa [#allocation3], 1 }
 0x17c   :  { %215 = vsyncpa [#allocation4], 1 }

</bundles_post_ra>
